<compile_context>
chip_gen: v7x
topology: tpu7x:2x2x1
jax: 0.10.0
libtpu: 0.0.40
codegen_flags: <defaults>
</compile_context>

<pallas_src>
import functools

import jax
import jax.numpy as jnp
from jax.experimental import pallas as pl
from jax.experimental.pallas import tpu as pltpu


def _cdiv(a, b):
    return -(-a // b)


def _round_up(x, m):
    return ((x + m - 1) // m) * m


def _bce_with_logits(x_f32, target):
    # Numerically stable BCEWithLogitsLoss(reduction='none'):
    #   loss = max(x, 0) - x * t + log1p(exp(-|x|))
    loss = jnp.maximum(x_f32, 0.0) + jnp.log1p(jnp.exp(-jnp.abs(x_f32)))
    if target != 0.0:
        loss = loss - x_f32 * jnp.float32(target)
    return loss


def _rows_kernel(x_ref, o_ref, *, target, inv_cols):
    # x_ref: (block_rows, C) logits; o_ref: (1, 1, block_rows) lane-dense means.
    loss = _bce_with_logits(x_ref[...].astype(jnp.float32), target)
    row_mean = jnp.sum(loss, axis=1) * inv_cols            # (block_rows,)
    o_ref[...] = row_mean.reshape(o_ref.shape).astype(o_ref.dtype)


def _channel_mean_kernel(x_ref, o_ref, *, target, inv_ch):
    # x_ref: (.., C, ..spatial..); o_ref: same block with C reduced to its mean.
    loss = _bce_with_logits(x_ref[...].astype(jnp.float32), target)
    o_ref[...] = (jnp.sum(loss, axis=1, keepdims=True) * inv_ch).astype(o_ref.dtype)


def _compiler_params(in_tile_bytes, out_tile_bytes, semantics):
    # Double-buffered in/out tiles + slack; keep inside v7x's 64 MiB VMEM.
    vmem = 2 * (in_tile_bytes + out_tile_bytes) + (2 << 20)
    vmem = int(min(max(vmem, 4 << 20), 48 << 20))
    return pltpu.CompilerParams(dimension_semantics=semantics,
                                vmem_limit_bytes=vmem)


def _choose_block_rows(n_rows, bytes_per_row, tile_bytes_target):
    fit = max(8, tile_bytes_target // max(1, bytes_per_row))   # rows per input buffer
    if n_rows <= 128 or fit < 128:
        # Small N (single small block) or very wide C (keep the tile in budget);
        # 16-multiples keep bf16 sublanes packed.
        # TODO(synk): for extremely wide C (8 rows already over budget) a
        # C-blocked reduction grid with a VMEM accumulator would be needed.
        return max(8, min(_round_up(n_rows, 16), (fit // 8) * 8))
    # 128-multiples -> unmasked lane-dense output stores; cap so the parallel
    # row grid keeps >=4 steps (feeds both v7x TensorCores + the DMA pipeline).
    quarter = _round_up(_cdiv(n_rows, 4), 128)
    return max(128, min((fit // 128) * 128, quarter))


def _choose_minor_block(extent, bytes_per_unit, tile_bytes_target, granule):
    # Block `extent` in multiples of `granule`, or keep the full axis if it fits.
    fit = max(1, tile_bytes_target // max(1, bytes_per_unit))
    if fit >= extent or extent <= granule:
        return extent
    return max(granule, (fit // granule) * granule)


def sigmoid_loss(x, for_real=True, for_G=False, *, alpha=1.0,
                 tile_bytes_target=8 * 1024 * 1024):
    """Pallas forward pass of the `sigmoid_loss` module.

    x: (N, C) or (N, C, *spatial) logits (f32 / bf16).
    Returns the per-sample (per-location for >2-D) mean BCE-with-logits loss,
    shape (-1, 1), in the input dtype (math is f32 in-kernel).
    """
    if for_G:
        for_real = True
    target = float(alpha) if for_real else 0.0

    if x.ndim < 2:
        raise ValueError("sigmoid_loss expects at least a 2-D input (N, C, ...)")
    orig_dtype = x.dtype
    itemsize = jnp.dtype(x.dtype).itemsize
    N, C = x.shape[0], x.shape[1]

    if x.ndim == 2:
        block_rows = _choose_block_rows(N, C * itemsize, tile_bytes_target)
        num_blocks = _cdiv(N, block_rows)
        kernel = functools.partial(_rows_kernel, target=target, inv_cols=1.0 / C)
        out = pl.pallas_call(
            kernel,
            out_shape=jax.ShapeDtypeStruct((num_blocks, 1, block_rows), jnp.float32),
            grid=(num_blocks,),
            in_specs=[pl.BlockSpec((block_rows, C), lambda i: (i, 0))],
            out_specs=pl.BlockSpec((1, 1, block_rows), lambda i: (i, 0, 0)),
            compiler_params=_compiler_params(block_rows * C * itemsize,
                                             block_rows * 4, ("parallel",)),
        )(x)
        # Rows past N (partial last block) hold garbage means; slice them off.
        out = out.reshape(num_blocks * block_rows, 1)[:N]
        return out.astype(orig_dtype)

    kernel = functools.partial(_channel_mean_kernel, target=target, inv_ch=1.0 / C)

    if x.ndim == 3:                      # (N, C, L): C on sublanes, L on lanes.
        L = x.shape[2]
        l_blk = _choose_minor_block(L, C * itemsize, tile_bytes_target, 128)
        out = pl.pallas_call(
            kernel,
            out_shape=jax.ShapeDtypeStruct((N, 1, L), jnp.float32),
            grid=(N, _cdiv(L, l_blk)),
            in_specs=[pl.BlockSpec((1, C, l_blk), lambda n, j: (n, 0, j))],
            out_specs=pl.BlockSpec((1, 1, l_blk), lambda n, j: (n, 0, j)),
            compiler_params=_compiler_params(C * l_blk * itemsize, l_blk * 4,
                                             ("parallel", "parallel")),
        )(x)
        return out.reshape(N * L, 1).astype(orig_dtype)

    # ndim >= 4: view as (N, C, M, W); W = minor dim (lanes), M = merged middle
    # spatial dims (identity for 4-D inputs; >4-D may relayout -- rare).
    W = x.shape[-1]
    M = 1
    for d in x.shape[2:-1]:
        M *= d
    if x.ndim > 4:
        x = x.reshape(N, C, M, W)
    per_sample_bytes = C * M * W * itemsize
    if per_sample_bytes <= tile_bytes_target // 2:
        # Whole samples per block; batch several, but keep >=4 grid steps.
        n_blk = min(N, max(1, tile_bytes_target // max(1, per_sample_bytes)),
                    max(1, _cdiv(N, 4)))
        m_blk = M
    else:
        n_blk = 1
        m_blk = _choose_minor_block(M, C * W * itemsize, tile_bytes_target, 8)
    out = pl.pallas_call(
        kernel,
        out_shape=jax.ShapeDtypeStruct((N, 1, M, W), jnp.float32),
        grid=(_cdiv(N, n_blk), _cdiv(M, m_blk)),
        in_specs=[pl.BlockSpec((n_blk, C, m_blk, W), lambda i, j: (i, 0, j, 0))],
        out_specs=pl.BlockSpec((n_blk, 1, m_blk, W), lambda i, j: (i, 0, j, 0)),
        compiler_params=_compiler_params(n_blk * C * m_blk * W * itemsize,
                                         n_blk * m_blk * W * 4,
                                         ("parallel", "parallel")),
    )(x)
    return out.reshape(N * M * W, 1).astype(orig_dtype)


def _reference(x, for_real=True, for_G=False, alpha=1.0):
    # Pure-JAX reference matching the PyTorch module.
    if for_G:
        for_real = True
    t = float(alpha) if for_real else 0.0
    xf = x.astype(jnp.float32)
    loss = jnp.maximum(xf, 0.0) - xf * t + jnp.log1p(jnp.exp(-jnp.abs(xf)))
    return jnp.mean(loss, axis=1).reshape(-1, 1).astype(x.dtype)


if __name__ == "__main__":
    key = jax.random.PRNGKey(0)
    k1, k2, k3, k4, k5, k6 = jax.random.split(key, 6)
    ok = True

    # 4-D discriminator-style logits (N, C, H, W): output is (N*H*W, 1).
    x4 = jax.random.normal(k1, (2, 4, 16, 16), dtype=jnp.float32) * 2.0
    for for_real, for_G in [(True, False), (False, False), (False, True)]:
        out = jax.block_until_ready(sigmoid_loss(x4, for_real=for_real, for_G=for_G))
        ref = _reference(x4, for_real=for_real, for_G=for_G)
        ok &= out.shape == ref.shape
        ok &= bool(jnp.allclose(out, ref, atol=1e-5, rtol=1e-5))

    # 4-D with odd, non-(8,128)-aligned dims (C=3, H=7, W=9).
    x4b = jax.random.normal(k4, (2, 3, 7, 9), dtype=jnp.float32) * 3.0
    out = jax.block_until_ready(sigmoid_loss(x4b, for_real=False))
    ref = _reference(x4b, for_real=False)
    ok &= out.shape == (2 * 7 * 9, 1)
    ok &= bool(jnp.allclose(out, ref, atol=1e-5, rtol=1e-5))

    # 4-D where several samples are batched per block and N is not a multiple
    # of the sample block (exercises clipped boundary writes on the N axis).
    x4c = jax.random.normal(k6, (5, 2, 4, 128), dtype=jnp.float32) * 2.0
    out = jax.block_until_ready(sigmoid_loss(x4c, for_real=True))
    ref = _reference(x4c, for_real=True)
    ok &= out.shape == (5 * 4 * 128, 1)
    ok &= bool(jnp.allclose(out, ref, atol=1e-5, rtol=1e-5))

    # 2-D logits with unaligned rows/cols (no padding; partial row block).
    x2 = jax.random.normal(k2, (12, 100), dtype=jnp.float32) * 3.0
    out = jax.block_until_ready(sigmoid_loss(x2, for_real=True))
    ref = _reference(x2, for_real=True)
    ok &= out.shape == (12, 1)
    ok &= bool(jnp.allclose(out, ref, atol=1e-5, rtol=1e-5))

    # 2-D, rows not a multiple of the 128-row blocks (partial last block), alpha!=1.
    x2b = jax.random.normal(k5, (300, 64), dtype=jnp.float32) * 2.0
    out = jax.block_until_ready(sigmoid_loss(x2b, for_real=True, alpha=0.5))
    ref = _reference(x2b, for_real=True, alpha=0.5)
    ok &= out.shape == (300, 1)
    ok &= bool(jnp.allclose(out, ref, atol=1e-5, rtol=1e-5))

    # bf16 logits (half HBM traffic); compute stays f32 in-kernel.
    xb = (jax.random.normal(k3, (16, 256), dtype=jnp.float32) * 2.0).astype(jnp.bfloat16)
    out = jax.block_until_ready(sigmoid_loss(xb, for_real=False))
    ref = _reference(xb, for_real=False)
    ok &= out.dtype == jnp.bfloat16
    ok &= bool(jnp.allclose(out.astype(jnp.float32), ref.astype(jnp.float32),
                            atol=1e-2, rtol=1e-2))

    print("KERNEL_OK" if ok else "KERNEL_MISMATCH")
</pallas_src>

<mosaic_0001>
module attributes {stable_mosaic.version = 11 : i64} {
  func.func @_channel_mean_kernel(%arg0: i32, %arg1: i32, %arg2: memref<1x4x16x16xf32, #tpu.memory_space<vmem>>, %arg3: memref<1x1x16x16xf32, #tpu.memory_space<vmem>>) attributes {dimension_semantics = [#tpu.dimension_semantics<parallel>, #tpu.dimension_semantics<parallel>], iteration_bounds = array<i64: 2, 1>, scalar_prefetch = 0 : i64, scratch_operands = 0 : i64, tpu.core_type = #tpu.core_type<tc>, window_params = [{transform_indices = @transform_0, window_bounds = array<i64: 1, 4, 16, 16>}, {transform_indices = @transform_1, window_bounds = array<i64: 1, 1, 16, 16>}]} {
    %c0 = arith.constant 0 : index
    %c0_0 = arith.constant 0 : index
    %c0_1 = arith.constant 0 : index
    %c0_2 = arith.constant 0 : index
    %0 = vector.load %arg2[%c0, %c0_0, %c0_1, %c0_2] : memref<1x4x16x16xf32, #tpu.memory_space<vmem>>, vector<1x4x16x16xf32>
    %cst = arith.constant 0.000000e+00 : f32
    %1 = vector.broadcast %cst : f32 to vector<1x4x16x16xf32>
    %2 = arith.maximumf %0, %1 : vector<1x4x16x16xf32>
    %3 = math.absf %0 : vector<1x4x16x16xf32>
    %cst_3 = arith.constant 0.000000e+00 : f32
    %4 = vector.broadcast %cst_3 : f32 to vector<1x4x16x16xf32>
    %5 = arith.subf %4, %3 : vector<1x4x16x16xf32>
    %6 = math.exp %5 : vector<1x4x16x16xf32>
    %7 = math.log1p %6 : vector<1x4x16x16xf32>
    %8 = arith.addf %2, %7 : vector<1x4x16x16xf32>
    %cst_4 = arith.constant 1.000000e+00 : f32
    %9 = vector.broadcast %cst_4 : f32 to vector<1x4x16x16xf32>
    %10 = arith.mulf %0, %9 : vector<1x4x16x16xf32>
    %11 = arith.subf %8, %10 : vector<1x4x16x16xf32>
    %cst_5 = arith.constant dense<0.000000e+00> : vector<1x16x16xf32>
    %12 = vector.multi_reduction <add>, %11, %cst_5 [1] : vector<1x4x16x16xf32> to vector<1x16x16xf32>
    %13 = vector.shape_cast %12 : vector<1x16x16xf32> to vector<1x1x16x16xf32>
    %cst_6 = arith.constant 2.500000e-01 : f32
    %14 = vector.broadcast %cst_6 : f32 to vector<1x1x16x16xf32>
    %15 = arith.mulf %13, %14 : vector<1x1x16x16xf32>
    %c0_7 = arith.constant 0 : index
    %c0_8 = arith.constant 0 : index
    %c0_9 = arith.constant 0 : index
    %c0_10 = arith.constant 0 : index
    %16 = vector.load %arg3[%c0_7, %c0_8, %c0_9, %c0_10] : memref<1x1x16x16xf32, #tpu.memory_space<vmem>>, vector<1x1x16x16xf32>
    tpu.vector_store %arg3[%c0_7, %c0_8, %c0_9, %c0_10], %15 {strides = array<i32>} : memref<1x1x16x16xf32, #tpu.memory_space<vmem>>, vector<1x1x16x16xf32>,
    return
  }
  func.func @transform_0(%arg0: i32, %arg1: i32) -> (i32, i32, i32, i32) {
    %c0_i32 = arith.constant 0 : i32
    %c0_i32_0 = arith.constant 0 : i32
    %c0_i32_1 = arith.constant 0 : i32
    return %arg0, %c0_i32, %arg1, %c0_i32_0 : i32, i32, i32, i32
  }
  func.func @transform_1(%arg0: i32, %arg1: i32) -> (i32, i32, i32, i32) {
    %c0_i32 = arith.constant 0 : i32
    %c0_i32_0 = arith.constant 0 : i32
    %c0_i32_1 = arith.constant 0 : i32
    return %arg0, %c0_i32, %arg1, %c0_i32_0 : i32, i32, i32, i32
  }
}

</mosaic_0001>

<bundles_post_ra>
// kernel: tpu_custom_call.1
= control target key start
LH: loop header
LB: loop body
LE: loop exit
PB: predicated region body
PF: predicated region fallthrough
CT: control target
= control target key end

     0   :  { %6 = vsyncpa [#allocation3], 0  ;;  %s958_s0 = inlined_call_operand.hbm [shape: f32[2,4,16,16], index: 0, kind: input, shape index: {}]   ;;  %s959_s1 = inlined_call_operand.hbm [shape: f32[2,1,16,16], index: 1, kind: output, shape index: {}]  }
   0x1   :  { %8 = vsyncpa [#allocation3 + $0x1], 0 }
   0x2   :  { %9 = vsyncpa [#allocation4], 0 }
   0x3   :  { %11 = vsyncpa [#allocation4 + $0x1], 0  ;;  %s658_s6 = smov 0   ;;  %s660_s7 = smov 0  }
   0x4   :  { %s662_s8 = smov 0   ;;  %s664_s9 = smov 0  }
   0x5   :  { %s666_s10 = smov 0   ;;  %s668_s11 = smov 0  }
   0x6 LB: > { %s413_s12 = sadd.s32 4294967295, %s640_s11   ;;  %s414_s13 = sadd.s32 4294967294, %s640_s11   ;;  %s640_s11 = sphi %s668_s11, %s17_s11   ;;  %s636_s10 = sphi %s666_s10, %s988_s10   ;;  %s632_s9 = sphi %s664_s9, %s987_s9   ;;  %s628_s8 = sphi %s662_s8, %s986_s8   ;;  %s624_s7 = sphi %s660_s7, %s985_s7   ;;  %s620_s6 = sphi %s658_s6, %s984_s6  }
   0x7   : > { %s29_s14 = sadd.s32 1, %s636_s10  ;;  %s38_s15 = sadd.s32 1, %s628_s8 }
   0x8   : > { %p31_p0 = scmp.ge.s32.totalorder %s29_s14, 2  ;;  %p45_p1 = scmp.ne.s32.totalorder %s628_s8, %s624_s7 }
   0x9   : > { %p46_p2 = scmp.eq.s32.totalorder %s640_s11, 0  ;;  %p51_p3 = scmp.ne.s32.totalorder %s624_s7, %s620_s6 }
   0xa   : > { %s990_s14 = smov (%p31_p0, %s29_s14), 0  ;;  %p52_p5 = scmp.eq.s32.totalorder %s413_s12, 0 }
   0xb   : > { %p699_p4 = por %p46_p2, %p45_p1  ;;  %s33_s17 = ssub.s32 %s636_s10, %s990_s14 }
   0xc   : > { %p77_p6 = scmp.eq.s32.totalorder %s413_s12, 1  ;;  %p36_p7 = scmp.eq.s32.totalorder %s33_s17, 0 }
   0xd   : > { %p705_p8 = por %p52_p5, %p51_p3  ;;  %p83_p10 = scmp.eq.s32.totalorder %s414_s13, 1 }
   0xe   : > { %p709_p9 = por %p77_p6, %p45_p1  ;;  %p442_p13 = scmp.lt.s32.totalorder %s640_s11, 2 }
   0xf   : > { %s714_s20 = scalar_select %p36_p7, %s628_s8, %s38_s15  }
  0x10   : > { %s963_s19 = scalar_select %p709_p9, 1, 0 }
  0x11   : > { %p716_p11 = por %p83_p10, %p51_p3  ;;  %s103_s22 = sand.u32 1, %s628_s8  }
  0x12   : > { %s417_s23 = sshll.u32 %s103_s22, 6  ;;  %s428_s24 = sshll.u32 %s636_s10, 10 }
  0x13   : > { %s964_s21 = scalar_select %p716_p11, 1, 0 }
  0x14   : > { %s727_s27 = scalar_lea.hbm %s958_s0, %s428_s24  ;;  %s107_s28 = scalar_lea.vmem [#allocation2], %s417_s23 }
  0x15   : > { %s116_s29 = sshll.u32 %s107_s28, 4  ;;  %p733_p0 = pnand %p442_p13, %p699_p4  ;;  %s729_s29 = int_to_ptr.vmem [resolvable:$true] %s116_s29 }
  0x16   : > { %s738_s2 = scalar_lea.sflag [#allocation3], %s103_s22  ;;  %s528_s3 = scalar_lea.hbm %s727_s27, 1024 }
  0x17   : > { %p529_p2 = scmp.ne.s32.totalorder %s727_s27, %s528_s3  ;;  %p530_p3 = pneg %p733_p0 }
  0x18   : > { %s533_s12 = scalar_lea.hbm %s958_s0, 2048  ;;  %p534_p4 = scmp.lt.u32.totalorder %s727_s27, %s958_s0 }
  0x19   : > { %p531_p5 = pnand %p530_p3, %p529_p2  ;;  %p535_p7 = scmp.lt.u32.totalorder %s533_s12, %s528_s3 }
  0x1a   : > { %p537_p13 = scmp.lt.u32.totalorder %s528_s3, %s727_s27 }
  0x1b   : > { %p532_p6 = pneg %p531_p5  ;;  %p536_p10 = por %p535_p7, %p534_p4 }
  0x1d   : > { %p538_p12 = por %p537_p13, %p536_p10 }
  0x1f   : > { %p539_p1 = pnand %p538_p12, %p532_p6 }
  0x21   : > { %542 = shalt.err (!%p539_p1)
}
  0x22   : > { %s543_s16 = scalar_lea.vmem %s729_s29, 1024  ;;  %s642_s17 = smov [#allocation2]  }
  0x23   : > { %p544_p2 = scmp.ne.s32.totalorder %s729_s29, %s543_s16  ;;  %s548_s22 = sshll.u32 %s642_s17, 4  ;;  %s549_s22 = int_to_ptr.vmem [resolvable:$false] %s548_s22 }
  0x24   : > { %s550_s23 = scalar_lea.vmem %s549_s22, 2048  ;;  %p551_p9 = scmp.lt.s32.totalorder %s729_s29, %s549_s22 }
  0x25   : > { %p546_p5 = pnand %p544_p2, %p530_p3  ;;  %p552_p4 = scmp.lt.s32.totalorder %s550_s23, %s543_s16 }
  0x27   : > { %p547_p11 = pneg %p546_p5  ;;  %p553_p7 = por %p552_p4, %p551_p9 }
  0x29   : > { %p554_p10 = pnand %p553_p7, %p547_p11 }
  0x2b   : > { %557 = shalt.err (!%p554_p10)
}
  0x2c   : > { %s643_s24 = smov 128   ;;  %s644_s25 = smov 8  }
  0x2d   : > { %437 = dma.hbm_to_vmem [thread:$0]  (!%p733_p0), %s727_s27, 1024, %s729_s29, %s738_s2, %s643_s24, %s643_s24, %s644_s25  }
  0x2e   : > { %p124_p12 = scmp.lt.s32.totalorder %s640_s11, 3  ;;  %p966_p1 = scmp.ge.s32.totalorder %s640_s11, 1 }
  0x30   : > { %p125_p3 = pnand %p966_p1, %p124_p12 }
  0x31   : > { %s770_s26 = sand.u32 (!%p125_p3), 1, %s624_s7  }
  0x32   : > { %128 = sbr.rel (%p125_p3) target bundleno = 126 (0x7e), region = 24  ;;  %s421_s28 = sshll.u32 (!%p125_p3), %s770_s26, 6 }
  0x33   : > { %s131_s3 = scalar_lea.sflag (!%p125_p3), [#allocation3], %s770_s26  ;;  %s134_s4 = scalar_lea.vmem (!%p125_p3), [#allocation2], %s421_s28 }
  0x39   : > { %611 = dma.done.wait (%p705_p8), %s131_s3, 1024  }
  0x3a   : > { %613 = vsyncadd (%p705_p8), %s131_s3, 4294966272  ;;  %v778_v0 = vld [vmem:[%s134_s4] sm:$0xff]  ;;  %v780_v1 = vld [vmem:[%s134_s4 + $0x10] sm:$0xff]  ;;  %vm291_vm2 = vcmask 130048   ;;  %s422_s18 = sshll.u32 %s770_s26, 4  ;;  %s429_s30 = sshll.u32 %s632_s9, 8 }
  0x3b   : > { %v782_v2 = vld [vmem:[%s134_s4 + $0x20] sm:$0xff]  ;;  %v784_v3 = vld [vmem:[%s134_s4 + $0x30] sm:$0xff]  ;;  %v171_v4 = vand.u32 2147483647, %v778_v0  ;;  %v173_v5 = vand.u32 2147483647, %v780_v1  ;;  %s908_s12 = scalar_lea.hbm %s959_s1, %s429_s30 }
  0x3c   : > { %v175_v6 = vand.u32 2147483647, %v782_v2  ;;  %v177_v7 = vand.u32 2147483647, %v784_v3  ;;  %v790_v9 = vld [vmem:[%s134_s4 + $0x8] sm:$0xff]  ;;  %v792_v12 = vld [vmem:[%s134_s4 + $0x18] sm:$0xff] }
  0x3d   : > { %v179_v8 = vsub.f32 0.0, %v171_v4  ;;  %v181_v10 = vsub.f32 0.0, %v173_v5  ;;  %v794_v13 = vld [vmem:[%s134_s4 + $0x28] sm:$0xff]  ;;  %v796_v16 = vld [vmem:[%s134_s4 + $0x38] sm:$0xff]  ;;  %v172_v19 = vand.u32 2147483647, %v790_v9 }
  0x3e   : > { %v183_v11 = vsub.f32 0.0, %v175_v6  ;;  %v185_v14 = vsub.f32 0.0, %v177_v7  ;;  %v174_v21 = vand.u32 2147483647, %v792_v12  ;;  %v176_v22 = vand.u32 2147483647, %v794_v13 }
  0x3f   : > { %v187_v15 = vmul.f32 1.442695, %v179_v8  ;;  %v191_v17 = vmul.f32 1.442695, %v181_v10  ;;  %v178_v23 = vand.u32 2147483647, %v796_v16 }
  0x40   : > { %v195_v18 = vmul.f32 1.442695, %v183_v11  ;;  %v199_v20 = vmul.f32 1.442695, %v185_v14  ;;  %v180_v24 = vsub.f32 0.0, %v172_v19  ;;  %v182_v25 = vsub.f32 0.0, %v174_v21 }
  0x41   : > { %496 = vpow2.f32 %v187_v15  ;;  %v184_v26 = vsub.f32 0.0, %v176_v22  ;;  %v186_v27 = vsub.f32 0.0, %v178_v23  ;;  %v163_v39 = vmax.f32 %v778_v0, 0.0  ;;  %s152_s27 = scalar_lea.vmem [#allocation5], %s422_s18  ;;  %s311_s13 = scalar_lea.sflag [#allocation4], %s770_s26 }
  0x42   : > { %498 = vpow2.f32 %v191_v17  ;;  %v189_v28 = vmul.f32 1.442695, %v180_v24  ;;  %v193_v29 = vmul.f32 1.442695, %v182_v25  ;;  %v165_v41 = vmax.f32 %v780_v1, 0.0  ;;  %s326_s29 = sshll.u32 %s152_s27, 4  ;;  %s903_s29 = int_to_ptr.vmem [resolvable:$true] %s326_s29 }
  0x43   : > { %500 = vpow2.f32 %v195_v18  ;;  %v197_v30 = vmul.f32 1.442695, %v184_v26  ;;  %v201_v31 = vmul.f32 1.442695, %v186_v27  ;;  %v167_v45 = vmax.f32 %v782_v2, 0.0  ;;  %s558_s15 = scalar_lea.vmem %s903_s29, 256 }
  0x44   : > { %502 = vpow2.f32 %v199_v20  ;;  %v169_v49 = vmax.f32 %v784_v3, 0.0  ;;  %v164_v52 = vmax.f32 %v790_v9, 0.0  ;;  %v166_v55 = vmax.f32 %v792_v12, 0.0  ;;  %p559_p8 = scmp.ne.s32.totalorder %s903_s29, %s558_s15  ;;  %p981_p9 = scmp.ne.s32.totalorder %s963_s19, 0 }
  0x45   : > { %504 = vpow2.f32 %v189_v28  ;;  %v168_v59 = vmax.f32 %v794_v13, 0.0  ;;  %s645_s9 = smov [#allocation5]  }
  0x46   : > { %506 = vpow2.f32 %v193_v29  ;;  %p560_p11 = pnand %p559_p8, %p981_p9  ;;  %s562_s16 = sshll.u32 %s645_s9, 4  ;;  %s563_s16 = int_to_ptr.vmem [resolvable:$false] %s562_s16 }
  0x47   : > { %508 = vpow2.f32 %v197_v30  ;;  %s564_s17 = scalar_lea.vmem %s563_s16, 512  ;;  %p565_p6 = scmp.lt.s32.totalorder %s903_s29, %s563_s16 }
  0x48   : > { %510 = vpow2.f32 %v201_v31  ;;  %p561_p0 = pneg %p560_p11  ;;  %p566_p13 = scmp.lt.s32.totalorder %s564_s17, %s558_s15 }
  0x4a   : > { %p567_p2 = por %p566_p13, %p565_p6 }
  0x4b   : > { %v497_v32 = vpop.eup %496 }
  0x4c   : > { %v499_v33 = vpop.eup %498  ;;  %v203_v34 = vadd.f32 1.0, %v497_v32  ;;  %v206_v36 = vmul.f32 -0.5, %v497_v32  ;;  %v209_v42 = vand.u32 2147483647, %v497_v32  ;;  %p568_p5 = pnand %p567_p2, %p561_p0 }
  0x4d   : > { %v501_v35 = vpop.eup %500  ;;  %v221_v37 = vadd.f32 1.0, %v499_v33  ;;  %v224_v43 = vmul.f32 -0.5, %v499_v33  ;;  %v227_v51 = vand.u32 2147483647, %v499_v33 }
  0x4e   : > { %v503_v38 = vpop.eup %502  ;;  %512 = vlog2.f32 %v203_v34  ;;  %v239_v40 = vadd.f32 1.0, %v501_v35  ;;  %v242_v46 = vmul.f32 -0.5, %v501_v35  ;;  %v207_v50 = vadd.f32 1.0, %v206_v36 }
  0x4f   : > { %514 = vlog2.f32 %v221_v37  ;;  %v505_v44 = vpop.eup %504  ;;  %v257_v47 = vadd.f32 1.0, %v503_v38  ;;  %v260_v54 = vmul.f32 -0.5, %v503_v38  ;;  %vm812_vm0 = vcmp.lt.f32.partialorder %v209_v42, 0.0004427343 }
  0x50   : > { %516 = vlog2.f32 %v239_v40  ;;  %v805_v48 = vpop.eup %506  ;;  %v212_v56 = vadd.f32 1.0, %v505_v44  ;;  %v225_v58 = vadd.f32 1.0, %v224_v43  ;;  %v215_v60 = vmul.f32 -0.5, %v505_v44 }
  0x51   : > { %v809_v53 = vpop.eup %508  ;;  %518 = vlog2.f32 %v257_v47  ;;  %v243_v62 = vadd.f32 1.0, %v242_v46  ;;  %v245_v63 = vand.u32 2147483647, %v501_v35  ;;  %v230_v4 = vadd.f32 1.0, %v805_v48 }
  0x52   : > { %v817_v61 = vpop.eup %510  ;;  %520 = vlog2.f32 %v212_v56  ;;  %v208_v5 = vmul.f32 %v497_v32, %v207_v50  ;;  %vm820_vm1 = vcmp.lt.f32.partialorder %v227_v51, 0.0004427343  ;;  %v263_v7 = vand.u32 2147483647, %v503_v38 }
  0x53   : > { %v248_v8 = vadd.f32 1.0, %v809_v53  ;;  %v261_v10 = vadd.f32 1.0, %v260_v54  ;;  %v218_v11 = vand.u32 2147483647, %v505_v44  ;;  %522 = vlog2.f32 %v230_v4 }
  0x54   : > { %v233_v14 = vmul.f32 -0.5, %v805_v48  ;;  %v226_v15 = vmul.f32 %v499_v33, %v225_v58  ;;  %v216_v17 = vadd.f32 1.0, %v215_v60  ;;  %v266_v18 = vadd.f32 1.0, %v817_v61 }
  0x55   : > { %524 = vlog2.f32 %v248_v8  ;;  %v244_v20 = vmul.f32 %v501_v35, %v243_v62  ;;  %vm827_vm3 = vcmp.lt.f32.partialorder %v245_v63, 0.0004427343  ;;  %v236_v22 = vand.u32 2147483647, %v805_v48 }
  0x56   : > { %v251_v23 = vmul.f32 -0.5, %v809_v53  ;;  %vm833_vm4 = vcmp.lt.f32.partialorder %v263_v7, 0.0004427343  ;;  %526 = vlog2.f32 %v266_v18  ;;  %v269_v27 = vmul.f32 -0.5, %v817_v61 }
  0x57   : > { %v262_v30 = vmul.f32 %v503_v38, %v261_v10  ;;  %vm838_vm5 = vcmp.lt.f32.partialorder %v218_v11, 0.0004427343  ;;  %v234_v32 = vadd.f32 1.0, %v233_v14  ;;  %v217_v35 = vmul.f32 %v505_v44, %v216_v17 }
  0x58   : > { %v513_v19 = vpop.eup %512  ;;  %v254_v36 = vand.u32 2147483647, %v809_v53  ;;  %vm849_vm6 = vcmp.lt.f32.partialorder %v236_v22, 0.0004427343  ;;  %v252_v43 = vadd.f32 1.0, %v251_v23  ;;  %v270_v50 = vadd.f32 1.0, %v269_v27 }
  0x59   : > { %v515_v24 = vpop.eup %514  ;;  %v205_v25 = vmul.f32 0.6931472, %v513_v19  ;;  %v272_v57 = vand.u32 2147483647, %v817_v61 }
  0x5a   : > { %v517_v28 = vpop.eup %516  ;;  %v223_v29 = vmul.f32 0.6931472, %v515_v24  ;;  %vm865_vm7 = vcmp.lt.f32.partialorder %v254_v36, 0.0004427343  ;;  %v253_v4 = vmul.f32 %v809_v53, %v252_v43  ;;  %v271_v8 = vmul.f32 %v817_v61, %v270_v50 }
  0x5b   : > { %v211_v33 = vsel %vm812_vm0, %v208_v5, %v205_v25  ;;  %v241_v34 = vmul.f32 0.6931472, %v517_v28  ;;  %v519_v37 = vpop.eup %518  ;;  %vm273_vm8 = vcmp.lt.f32.partialorder %v272_v57, 0.0004427343 }
  0x5c   : > { %v229_v40 = vsel %vm820_vm1, %v226_v15, %v223_v29  ;;  %v275_v42 = vadd.f32 %v211_v33, %v163_v39  ;;  %v259_v47 = vmul.f32 0.6931472, %v519_v37  ;;  %v521_v51 = vpop.eup %520  ;;  %v235_v39 = vmul.f32 %v805_v48, %v234_v32 }
  0x5d   : > { %v247_v46 = vsel %vm827_vm3, %v244_v20, %v241_v34  ;;  %v277_v44 = vadd.f32 %v229_v40, %v165_v41  ;;  %v214_v62 = vmul.f32 0.6931472, %v521_v51  ;;  %v523_v41 = vpop.eup %522  ;;  %v170_v15 = vmax.f32 %v796_v16, 0.0 }
  0x5e   : > { %v279_v54 = vadd.f32 %v247_v46, %v167_v45  ;;  %v283_v56 = vsub.f32 %v275_v42, %v778_v0  ;;  %v265_v58 = vsel %vm833_vm4, %v262_v30, %v259_v47  ;;  %v232_v7 = vmul.f32 0.6931472, %v523_v41 }
  0x5f   : > { %v285_v60 = vsub.f32 %v277_v44, %v780_v1  ;;  %v281_v45 = vadd.f32 %v265_v58, %v169_v49  ;;  %v525_v5 = vpop.eup %524  ;;  %v220_v1 = vsel %vm838_vm5, %v217_v35, %v214_v62 }
  0x60   : > { %v287_v0 = vsub.f32 %v279_v54, %v782_v2  ;;  %v292_v48 = vsel %vm291_vm2, %v283_v56, 0.0  ;;  %v250_v2 = vmul.f32 0.6931472, %v525_v5  ;;  %v527_v14 = vpop.eup %526  ;;  %v238_v53 = vsel %vm849_vm6, %v235_v39, %v232_v7 }
  0x61   : > { %v293_v6 = vsel %vm291_vm2, %v285_v60, 0.0  ;;  %v289_v10 = vsub.f32 %v281_v45, %v784_v3  ;;  %v276_v17 = vadd.f32 %v220_v1, %v164_v52  ;;  %v268_v19 = vmul.f32 0.6931472, %v527_v14 }
  0x62   : > { %v294_v11 = vadd.f32 %v293_v6, %v292_v48  ;;  %v295_v49 = vsel %vm291_vm2, %v287_v0, 0.0  ;;  %v256_v3 = vsel %vm865_vm7, %v253_v4, %v250_v2  ;;  %v278_v20 = vadd.f32 %v238_v53, %v166_v55 }
  0x63   : > { %v297_v61 = vsel %vm291_vm2, %v289_v10, 0.0  ;;  %v280_v21 = vadd.f32 %v256_v3, %v168_v59  ;;  %v284_v22 = vsub.f32 %v276_v17, %v790_v9  ;;  %v274_v24 = vsel %vm273_vm8, %v271_v8, %v268_v19 }
  0x64   : > { %v296_v18 = vadd.f32 %v295_v49, %v294_v11  ;;  %v282_v52 = vadd.f32 %v274_v24, %v170_v15  ;;  %v286_v25 = vsub.f32 %v278_v20, %v792_v12 }
  0x65   : > { %v288_v26 = vsub.f32 %v280_v21, %v794_v13  ;;  %v299_v27 = vsel %vm291_vm2, %v284_v22, 0.0 }
  0x66   : > { %v298_v23 = vadd.f32 %v297_v61, %v296_v18  ;;  %v290_v29 = vsub.f32 %v282_v52, %v796_v16  ;;  %v300_v55 = vsel %vm291_vm2, %v286_v25, 0.0 }
  0x67   : > { %v302_v59 = vsel %vm291_vm2, %v288_v26, 0.0  ;;  %v301_v9 = vadd.f32 %v300_v55, %v299_v27 }
  0x68   : > { %v306_v28 = vmul.f32 0.25, %v298_v23  ;;  %v304_v30 = vsel %vm291_vm2, %v290_v29, 0.0 }
  0x69   : > { %v303_v12 = vadd.f32 %v302_v59, %v301_v9 }
  0x6a   : > { %308 = vst.msk [vmem:[%s152_s27] sm:$0xff] %vm291_vm2, %v306_v28 }
  0x6b   : > { %v305_v13 = vadd.f32 %v304_v30, %v303_v12 }
  0x6d   : > { %v307_v16 = vmul.f32 0.25, %v305_v13 }
  0x6f   : > { %309 = vst.msk [vmem:[%s152_s27 + $0x8] sm:$0xff] %vm291_vm2, %v307_v16 }
  0x70   : > { %571 = shalt.err (!%p568_p5)
}
  0x71   : > { %s572_s22 = scalar_lea.hbm %s908_s12, 256  ;;  %s576_s25 = scalar_lea.hbm %s959_s1, 512 }
  0x72   : > { %p573_p4 = scmp.ne.s32.totalorder %s908_s12, %s572_s22  ;;  %p577_p12 = scmp.lt.u32.totalorder %s908_s12, %s959_s1 }
  0x73   : > { %p578_p1 = scmp.lt.u32.totalorder %s576_s25, %s572_s22  ;;  %p580_p8 = scmp.lt.u32.totalorder %s572_s22, %s908_s12 }
  0x74   : > { %p574_p7 = pnand %p573_p4, %p981_p9 }
  0x75   : > { %p579_p3 = por %p578_p1, %p577_p12 }
  0x76   : > { %p575_p10 = pneg %p574_p7 }
  0x77   : > { %p581_p11 = por %p580_p8, %p579_p3 }
  0x79   : > { %p582_p0 = pnand %p581_p11, %p575_p10 }
  0x7b   : > { %585 = shalt.err (!%p582_p0)
}
  0x7c   : > { %s646_s4 = smov 128   ;;  %s647_s18 = smov 8  }
  0x7d   : > { %432 = dma.vmem_to_hbm [thread:$0]  (%p981_p9), %s903_s29, 256, %s908_s12, %s311_s13, %s646_s4, %s646_s4, %s647_s18  }
  0x7e PF: > { %s341_s27 = sand.u32 1, %s620_s6   ;;  %p982_p6 = scmp.ne.s32.totalorder %s964_s21, 0 }
  0x7f   : > { %p983_p13 = scmp.ge.s32.totalorder %s640_s11, 2  ;;  %s342_s30 = scalar_lea.sflag [#allocation4], %s341_s27 }
  0x81   : > { %p439_p2 = pnand %p983_p13, %p982_p6 }
  0x83   : > { %615 = dma.done.wait (!%p439_p2), %s342_s30, 256  }
  0x84   : > { %617 = vsyncadd (!%p439_p2), %s342_s30, 4294967040  ;;  %s17_s11 = sadd.s32 1, %s640_s11   ;;  %s984_s6 = smov %s624_s7 }
  0x85   : > { %p14_p5 = scmp.ge.s32.totalorder %s17_s11, 4   ;;  %s985_s7 = smov %s628_s8 }
  0x86   : > { %s986_s8 = smov %s714_s20  ;;  %s987_s9 = smov %s636_s10 }
  0x87   : > { %s988_s10 = smov %s990_s14  ;;  %16 = sbr.rel (!%p14_p5) target bundleno = 6 (0x6), region = 69 }
  0x8e   :  { %347 = vsyncpa [#allocation3], 1 }
  0x8f   :  { %349 = vsyncpa [#allocation3 + $0x1], 1 }
  0x90   :  { %350 = vsyncpa [#allocation4], 1 }
  0x91   :  { %352 = vsyncpa [#allocation4 + $0x1], 1 }

</bundles_post_ra>
